<compile_context>
chip_gen: v5e
topology: v5e:2x2
jax: 0.10.0
libtpu: 0.0.40
codegen_flags: <defaults>
</compile_context>

<pallas_src>
import jax
import jax.numpy as jnp
from jax.experimental import pallas as pl
from jax.experimental.pallas import tpu as pltpu


def _round_up(n, m):
    return ((n + m - 1) // m) * m


def _cdiv(a, b):
    return (a + b - 1) // b


def _mlp_kernel(xT_ref, w1_ref, b1_ref, w2_ref, b2_ref, w3_ref, b3_ref, oT_ref):
    xT = xT_ref[...]                                                    # [4, TB] bf16

    # fc1 (MXU, f32 accumulate) + bias + ReLU.  Emit the [128,TB] intermediate
    # directly in bf16: it is fc2's MXU input dtype anyway, and bf16 halves the
    # VMEM spill / store-slot traffic of this tile.
    h1 = jnp.dot(w1_ref[...], xT, preferred_element_type=jnp.float32)   # [128, TB] f32
    h1 = jnp.maximum(h1 + b1_ref[...], 0.0).astype(jnp.bfloat16)        # [128, TB] bf16

    # fc2 (MXU, f32 accumulate) + bias + ReLU; stays f32 for the VPU fc3.
    h2 = jnp.dot(w2_ref[...], h1, preferred_element_type=jnp.float32)   # [64, TB] f32
    h2 = jnp.maximum(h2 + b2_ref[...], 0.0)

    # fc3: out[0, j] = sum_i w3[i, 0] * h2[i, j] + b3.  M=1, so keep it off the
    # MXU: VPU multiply + sublane reduction over 64 rows (VPU/XLU have slack).
    out = jnp.sum(w3_ref[...] * h2, axis=0, keepdims=True) + b3_ref[...]  # [1, TB] f32
    oT_ref[...] = out.astype(oT_ref.dtype)


def _choose_batch_tile(b_cols, tb_max):
    """Lane-dense batch tile: multiple of 128, <= tb_max, minimal padding waste,
    and >= 2 grid steps when there is enough work (so the 'parallel' axis can
    shard over both v7x TensorCores)."""
    tb_max = max(128, _round_up(tb_max, 128))
    if b_cols <= 128:
        return 128
    n_tiles = max(2, _cdiv(b_cols, tb_max))
    return min(tb_max, _round_up(_cdiv(b_cols, n_tiles), 128))


def _vmem_limit_bytes(tb):
    """Explicit scoped-VMEM budget for the chosen tile (v7x: 64 MiB physical /
    32 MiB scoped default; v5e: 16 MiB scoped default)."""
    x_tiles = 2 * 16 * tb * 2                       # (4,TB) bf16, sublane-padded, 2 buffers
    out_tiles = 2 * 8 * tb * 4                      # (1,TB) f32, sublane-padded, 2 buffers
    params = 256 * 1024                             # resident weights/biases (padded), generous
    inter = 128 * tb * (4 + 2) + 64 * tb * 4        # h1 (f32 + bf16), h2 (f32)
    est = x_tiles + out_tiles + params + inter
    return int(min(48 * 1024 * 1024, max(8 * 1024 * 1024, 2 * est)))


def tabular_mlp_feature_major(xT, w1, b1, w2, b2, w3, b3, *, tb_max=8192,
                              out_dtype=jnp.float32):
    """Preferred entry point: x already feature-major (no layout pre-pass).

    xT : [4, B] feature-major activations (bf16 recommended; cast here if not).
    w1 : [128, 4], w2 : [64, 128], w3 : [1, 64]  (PyTorch [out, in] layout).
    b1 : [128], b2 : [64], b3 : [1].
    Returns the feature-major output row [1, B] in out_dtype."""
    assert xT.shape[0] == 4
    b_cols = xT.shape[1]

    cdt = jnp.bfloat16
    xT = xT.astype(cdt)
    w1c = w1.astype(cdt)                              # MXU inputs -> bf16
    w2c = w2.astype(cdt)
    w3c = w3.astype(jnp.float32).reshape(-1, 1)       # [64, 1] column for VPU fc3
    b1c = b1.astype(jnp.float32).reshape(-1, 1)       # [128, 1]
    b2c = b2.astype(jnp.float32).reshape(-1, 1)       # [64, 1]
    b3c = b3.astype(jnp.float32).reshape(-1, 1)       # [1, 1]

    tb = _choose_batch_tile(b_cols, tb_max)
    n_tiles = _cdiv(b_cols, tb)

    const = lambda shape: pl.BlockSpec(shape, lambda i: (0, 0))

    param_bytes = sum(int(a.size) * a.dtype.itemsize
                      for a in (w1c, w2c, w3c, b1c, b2c, b3c))
    cost = pl.CostEstimate(
        flops=2 * b_cols * (4 * 128 + 128 * 64 + 64),
        transcendentals=0,
        bytes_accessed=int(xT.size) * xT.dtype.itemsize       # streamed input
                       + b_cols * jnp.dtype(out_dtype).itemsize  # output row
                       + param_bytes,
    )

    return pl.pallas_call(
        _mlp_kernel,
        out_shape=jax.ShapeDtypeStruct((1, b_cols), out_dtype),
        grid=(n_tiles,),
        in_specs=[
            pl.BlockSpec((4, tb), lambda i: (0, i)),   # x tile: streamed / double-buffered
            const(w1c.shape), const(b1c.shape),        # params: constant index -> resident
            const(w2c.shape), const(b2c.shape),
            const(w3c.shape), const(b3c.shape),
        ],
        out_specs=pl.BlockSpec((1, tb), lambda i: (0, i)),
        compiler_params=pltpu.CompilerParams(
            dimension_semantics=("parallel",),         # v7x: shard batch tiles over both TCs
            vmem_limit_bytes=_vmem_limit_bytes(tb),
        ),
        cost_estimate=cost,
    )(xT, w1c, b1c, w2c, b2c, w3c, b3c)


def tabular_mlp(x, w1, b1, w2, b2, w3, b3, *, tb_max=8192):
    """PyTorch-layout compatibility wrapper.

    x: [B, 4] float (as in TabularMLP.forward).  Returns [B, 1] f32.

    NOTE: this path materializes x as feature-major bf16 [4, B'] before the
    kernel (one extra HBM pass over x).  In production, produce x in that
    layout upstream and call tabular_mlp_feature_major directly."""
    B = x.shape[0]
    assert x.shape[1] == 4
    b_cols = _round_up(max(B, 1), 128)                 # lane-align; <=127 padded columns
    if b_cols == B:
        xT = x.astype(jnp.bfloat16).T
    else:
        xT = jnp.zeros((4, b_cols), jnp.bfloat16).at[:, :B].set(x.astype(jnp.bfloat16).T)
    outT = tabular_mlp_feature_major(xT, w1, b1, w2, b2, w3, b3, tb_max=tb_max)
    return outT[:, :B].reshape(B, 1)


def init_params(key):
    """Deterministic init mimicking PyTorch Linear default: U(-1/sqrt(fan_in), +).
    Weights are in PyTorch layout [out, in]; biases are [out]."""
    ks = jax.random.split(key, 6)

    def linear(kw, kb, fan_in, fan_out):
        bound = fan_in ** -0.5
        w = jax.random.uniform(kw, (fan_out, fan_in), jnp.float32, -bound, bound)
        b = jax.random.uniform(kb, (fan_out,), jnp.float32, -bound, bound)
        return w, b

    w1, b1 = linear(ks[0], ks[1], 4, 128)
    w2, b2 = linear(ks[2], ks[3], 128, 64)
    w3, b3 = linear(ks[4], ks[5], 64, 1)
    return w1, b1, w2, b2, w3, b3


if __name__ == "__main__":
    key = jax.random.PRNGKey(0)
    k_x, k_p = jax.random.split(key)

    B = 8                                              # small batch
    x = jax.random.normal(k_x, (B, 4), jnp.float32)
    w1, b1, w2, b2, w3, b3 = init_params(k_p)

    out = tabular_mlp(x, w1, b1, w2, b2, w3, b3)
    out = jax.block_until_ready(out)
    assert out.shape == (B, 1)

    # Reference in plain JAX with the kernel's documented numerics:
    # bf16 x/w1/w2 MXU inputs, f32 accumulation, f32 bias + ReLU, f32 fc3.
    bf = jnp.bfloat16
    xb = x.astype(bf)
    h1 = jnp.maximum(
        jnp.dot(xb, w1.astype(bf).T, preferred_element_type=jnp.float32) + b1, 0.0)
    h2 = jnp.maximum(
        jnp.dot(h1.astype(bf), w2.astype(bf).T, preferred_element_type=jnp.float32) + b2, 0.0)
    ref = (jnp.dot(h2, w3.T) + b3).reshape(B, 1)

    err = float(jnp.max(jnp.abs(out - ref)))
    assert jnp.allclose(out, ref, atol=2e-2, rtol=2e-2), err

    print("KERNEL_OK")
</pallas_src>

<mosaic_0001>
module attributes {stable_mosaic.version = 11 : i64} {
  func.func @_mlp_kernel(%arg0: i32, %arg1: memref<4x128xbf16, #tpu.memory_space<vmem>>, %arg2: memref<128x4xbf16, #tpu.memory_space<vmem>>, %arg3: memref<128x1xf32, #tpu.memory_space<vmem>>, %arg4: memref<64x128xbf16, #tpu.memory_space<vmem>>, %arg5: memref<64x1xf32, #tpu.memory_space<vmem>>, %arg6: memref<64x1xf32, #tpu.memory_space<vmem>>, %arg7: memref<1x1xf32, #tpu.memory_space<vmem>>, %arg8: memref<1x128xf32, #tpu.memory_space<vmem>>) attributes {dimension_semantics = [#tpu.dimension_semantics<parallel>], iteration_bounds = array<i64: 1>, scalar_prefetch = 0 : i64, scratch_operands = 0 : i64, tpu.core_type = #tpu.core_type<tc>, window_params = [{transform_indices = @transform_0, window_bounds = array<i64: 4, 128>}, {pipeline_mode = #tpu.pipeline_mode<synchronous>, transform_indices = @transform_1, window_bounds = array<i64: 128, 4>}, {pipeline_mode = #tpu.pipeline_mode<synchronous>, transform_indices = @transform_2, window_bounds = array<i64: 128, 1>}, {pipeline_mode = #tpu.pipeline_mode<synchronous>, transform_indices = @transform_3, window_bounds = array<i64: 64, 128>}, {pipeline_mode = #tpu.pipeline_mode<synchronous>, transform_indices = @transform_4, window_bounds = array<i64: 64, 1>}, {pipeline_mode = #tpu.pipeline_mode<synchronous>, transform_indices = @transform_5, window_bounds = array<i64: 64, 1>}, {pipeline_mode = #tpu.pipeline_mode<synchronous>, transform_indices = @transform_6, window_bounds = array<i64: 1, 1>}, {transform_indices = @transform_7, window_bounds = array<i64: 1, 128>}]} {
    %c0 = arith.constant 0 : index
    %c0_0 = arith.constant 0 : index
    %0 = vector.load %arg1[%c0, %c0_0] : memref<4x128xbf16, #tpu.memory_space<vmem>>, vector<4x128xbf16>
    %c0_1 = arith.constant 0 : index
    %c0_2 = arith.constant 0 : index
    %1 = vector.load %arg2[%c0_1, %c0_2] : memref<128x4xbf16, #tpu.memory_space<vmem>>, vector<128x4xbf16>
    %cst = arith.constant dense<0.000000e+00> : vector<128x128xf32>
    %2 = tpu.matmul %1, %0, %cst {dimension_numbers = #tpu.dot_dimension_numbers<[1], [0], [0], [1], [0, 0, 1, 1], [], []>} : vector<128x4xbf16>, vector<4x128xbf16>, vector<128x128xf32> -> vector<128x128xf32>
    %c0_3 = arith.constant 0 : index
    %c0_4 = arith.constant 0 : index
    %3 = vector.load %arg3[%c0_3, %c0_4] : memref<128x1xf32, #tpu.memory_space<vmem>>, vector<128x1xf32>
    %4 = vector.broadcast %3 : vector<128x1xf32> to vector<128x128xf32>
    %5 = arith.addf %2, %4 : vector<128x128xf32>
    %cst_5 = arith.constant 0.000000e+00 : f32
    %6 = vector.broadcast %cst_5 : f32 to vector<128x128xf32>
    %7 = arith.maximumf %5, %6 : vector<128x128xf32>
    %8 = arith.truncf %7 : vector<128x128xf32> to vector<128x128xbf16>
    %c0_6 = arith.constant 0 : index
    %c0_7 = arith.constant 0 : index
    %9 = vector.load %arg4[%c0_6, %c0_7] : memref<64x128xbf16, #tpu.memory_space<vmem>>, vector<64x128xbf16>
    %cst_8 = arith.constant dense<0.000000e+00> : vector<64x128xf32>
    %10 = tpu.matmul %9, %8, %cst_8 {dimension_numbers = #tpu.dot_dimension_numbers<[1], [0], [0], [1], [0, 0, 1, 1], [], []>} : vector<64x128xbf16>, vector<128x128xbf16>, vector<64x128xf32> -> vector<64x128xf32>
    %c0_9 = arith.constant 0 : index
    %c0_10 = arith.constant 0 : index
    %11 = vector.load %arg5[%c0_9, %c0_10] : memref<64x1xf32, #tpu.memory_space<vmem>>, vector<64x1xf32>
    %12 = vector.broadcast %11 : vector<64x1xf32> to vector<64x128xf32>
    %13 = arith.addf %10, %12 : vector<64x128xf32>
    %cst_11 = arith.constant 0.000000e+00 : f32
    %14 = vector.broadcast %cst_11 : f32 to vector<64x128xf32>
    %15 = arith.maximumf %13, %14 : vector<64x128xf32>
    %c0_12 = arith.constant 0 : index
    %c0_13 = arith.constant 0 : index
    %16 = vector.load %arg6[%c0_12, %c0_13] : memref<64x1xf32, #tpu.memory_space<vmem>>, vector<64x1xf32>
    %17 = vector.broadcast %16 : vector<64x1xf32> to vector<64x128xf32>
    %18 = arith.mulf %17, %15 : vector<64x128xf32>
    %cst_14 = arith.constant dense<0.000000e+00> : vector<128xf32>
    %19 = vector.multi_reduction <add>, %18, %cst_14 [0] : vector<64x128xf32> to vector<128xf32>
    %20 = vector.shape_cast %19 : vector<128xf32> to vector<1x128xf32>
    %c0_15 = arith.constant 0 : index
    %c0_16 = arith.constant 0 : index
    %21 = vector.load %arg7[%c0_15, %c0_16] : memref<1x1xf32, #tpu.memory_space<vmem>>, vector<1x1xf32>
    %22 = vector.broadcast %21 : vector<1x1xf32> to vector<1x128xf32>
    %23 = arith.addf %20, %22 : vector<1x128xf32>
    %c0_17 = arith.constant 0 : index
    %c0_18 = arith.constant 0 : index
    %24 = vector.load %arg8[%c0_17, %c0_18] : memref<1x128xf32, #tpu.memory_space<vmem>>, vector<1x128xf32>
    tpu.vector_store %arg8[%c0_17, %c0_18], %23 {strides = array<i32>} : memref<1x128xf32, #tpu.memory_space<vmem>>, vector<1x128xf32>,
    return
  }
  func.func @transform_0(%arg0: i32) -> (i32, i32) {
    %c0_i32 = arith.constant 0 : i32
    %c0_i32_0 = arith.constant 0 : i32
    return %c0_i32, %arg0 : i32, i32
  }
  func.func @transform_1(%arg0: i32) -> (i32, i32) {
    %c0_i32 = arith.constant 0 : i32
    %c0_i32_0 = arith.constant 0 : i32
    %c0_i32_1 = arith.constant 0 : i32
    return %c0_i32, %c0_i32_0 : i32, i32
  }
  func.func @transform_2(%arg0: i32) -> (i32, i32) {
    %c0_i32 = arith.constant 0 : i32
    %c0_i32_0 = arith.constant 0 : i32
    %c0_i32_1 = arith.constant 0 : i32
    return %c0_i32, %c0_i32_0 : i32, i32
  }
  func.func @transform_3(%arg0: i32) -> (i32, i32) {
    %c0_i32 = arith.constant 0 : i32
    %c0_i32_0 = arith.constant 0 : i32
    %c0_i32_1 = arith.constant 0 : i32
    return %c0_i32, %c0_i32_0 : i32, i32
  }
  func.func @transform_4(%arg0: i32) -> (i32, i32) {
    %c0_i32 = arith.constant 0 : i32
    %c0_i32_0 = arith.constant 0 : i32
    %c0_i32_1 = arith.constant 0 : i32
    return %c0_i32, %c0_i32_0 : i32, i32
  }
  func.func @transform_5(%arg0: i32) -> (i32, i32) {
    %c0_i32 = arith.constant 0 : i32
    %c0_i32_0 = arith.constant 0 : i32
    %c0_i32_1 = arith.constant 0 : i32
    return %c0_i32, %c0_i32_0 : i32, i32
  }
  func.func @transform_6(%arg0: i32) -> (i32, i32) {
    %c0_i32 = arith.constant 0 : i32
    %c0_i32_0 = arith.constant 0 : i32
    %c0_i32_1 = arith.constant 0 : i32
    return %c0_i32, %c0_i32_0 : i32, i32
  }
  func.func @transform_7(%arg0: i32) -> (i32, i32) {
    %c0_i32 = arith.constant 0 : i32
    %c0_i32_0 = arith.constant 0 : i32
    return %c0_i32, %arg0 : i32, i32
  }
}

</mosaic_0001>

<bundles_post_ra>
// kernel: tpu_custom_call.1
= control target key start
LH: loop header
LB: loop body
LE: loop exit
PB: predicated region body
PF: predicated region fallthrough
CT: control target
= control target key end

     0   :  { %s801_s0 = inlined_call_operand.vmem [shape: bf16[4,128], index: 0, kind: input, shape index: {}]   ;;  %s802_s1 = inlined_call_operand.vmem [shape: bf16[128,4], index: 1, kind: input, shape index: {}]   ;;  %s803_s2 = inlined_call_operand.vmem [shape: f32[128,1], index: 2, kind: input, shape index: {}]   ;;  %s804_s3 = inlined_call_operand.vmem [shape: bf16[64,128], index: 3, kind: input, shape index: {}]   ;;  %s805_s4 = inlined_call_operand.vmem [shape: f32[64,1], index: 4, kind: input, shape index: {}]   ;;  %s806_s5 = inlined_call_operand.vmem [shape: f32[64,1], index: 5, kind: input, shape index: {}]   ;;  %s807_s6 = inlined_call_operand.<no memory space> [shape: f32[1,1], index: 6, kind: input, shape index: {}]   ;;  %s808_s7 = inlined_call_operand.hbm [shape: f32[1,128], index: 7, kind: output, shape index: {}]  }
   0x1   :  { %v12_v0 = vstv %s807_s6 }
   0x2   :  { %13 = vst [vmem:[#allocation2] sm:$0x1] %v12_v0 }
   0x3   :  { %v61_v1 = vld [vmem:[%s803_s2 + $0x70] sm:$0xff]  ;;  %v59_v2 = vld [vmem:[%s803_s2 + $0x60] sm:$0xff]  ;;  %vm208_vm0 = vcmask 1041408   ;;  %v604_v4 = vmov 0   ;;  %vm183_vm1 = vcmask 31744   ;;  %v62_v9 = vld [vmem:[%s803_s2 + $0x78] sm:$0xff] }
   0x4   :  { %v30_v3 = vld [vmem:[%s801_s0] sm:$0x3]  ;;  %576 = vset.pattern.permute.xlu1 %v604_v4  ;;  %575 = vset.pattern.permute.xlu0 %v604_v4  ;;  %v57_v8 = vld [vmem:[%s803_s2 + $0x50] sm:$0xff]  ;;  %v60_v10 = vld [vmem:[%s803_s2 + $0x68] sm:$0xff] }
   0x5   :  { %v210_v5 = vsel %vm208_vm0, %v30_v3, 0  ;;  %135 = vperm.xlu0 %575, %v61_v1   ;;  %125 = vperm.xlu1 %576, %v59_v2   ;;  %v552_v6 = vld [vmem:[%s802_s1] sm:$0xff] }
   0x6   :  { %v556_v7 = vld [vmem:[%s802_s1 + $0x20] sm:$0xff]  ;;  %219 = vmatpush.bf16.msra.mxu0 %v210_v5  ;;  %564 = vmatpush.bf16.msra.mxu2 %v210_v5 }
   0x7   :  { %577 = vset.pattern.permute.xlu2 %v604_v4 }
   0x8   :  { %115 = vperm.xlu2 %577, %v57_v8  }
   0x9   :  { %528 = vmatmul.msk.bf16.vlgmr.msra.gmra.mxu0 %vm183_vm1, %v552_v6  ;;  %532 = vmatmul.msk.bf16.vlgmr.msra.gmra.mxu2 %vm183_vm1, %v556_v7 }
   0xa   :  { %14 = vsyncpa [#allocation4], 0  ;;  %v58_v11 = vld [vmem:[%s803_s2 + $0x58] sm:$0xff]  ;;  %v56_v12 = vld [vmem:[%s803_s2 + $0x48] sm:$0xff] }
   0xb   :  { %v55_v13 = vld [vmem:[%s803_s2 + $0x40] sm:$0xff]  ;;  %v553_v14 = vld [vmem:[%s802_s1 + $0x8] sm:$0xff]  ;;  %v53_v16 = vld [vmem:[%s803_s2 + $0x30] sm:$0xff] }
   0xc   :  { %v557_v15 = vld [vmem:[%s802_s1 + $0x28] sm:$0xff]  ;;  %v54_v17 = vld [vmem:[%s803_s2 + $0x38] sm:$0xff]  ;;  %v51_v18 = vld [vmem:[%s803_s2 + $0x20] sm:$0xff] }
   0xd   :  { %140 = vperm.xlu0 %575, %v62_v9   ;;  %130 = vperm.xlu1 %576, %v60_v10   ;;  %v52_v19 = vld [vmem:[%s803_s2 + $0x28] sm:$0xff]  ;;  %v50_v20 = vld [vmem:[%s803_s2 + $0x18] sm:$0xff]  ;;  %v49_v21 = vld [vmem:[%s803_s2 + $0x10] sm:$0xff] }
   0xe   :  { %v554_v22 = vld [vmem:[%s802_s1 + $0x10] sm:$0xff]  ;;  %v47_v24 = vld [vmem:[%s803_s2] sm:$0xff]  ;;  %v48_v26 = vld [vmem:[%s803_s2 + $0x8] sm:$0xff] }
   0xf   :  { %v558_v23 = vld [vmem:[%s802_s1 + $0x30] sm:$0xff]  ;;  %v293_v25 = vld [vmem:[%s805_s4] sm:$0xff]  ;;  %v294_v27 = vld [vmem:[%s805_s4 + $0x8] sm:$0xff] }
  0x10   :  { %120 = vperm.xlu2 %577, %v58_v11   ;;  %v296_v28 = vld [vmem:[%s805_s4 + $0x18] sm:$0xff]  ;;  %v295_v29 = vld [vmem:[%s805_s4 + $0x10] sm:$0xff]  ;;  %v297_v32 = vld [vmem:[%s805_s4 + $0x20] sm:$0xff] }
  0x11   :  { %v555_v30 = vld [vmem:[%s802_s1 + $0x18] sm:$0xff]  ;;  %v402_v33 = vld [vmem:[%s806_s5] sm:$0xff]  ;;  %v298_v34 = vld [vmem:[%s805_s4 + $0x28] sm:$0xff] }
  0x12   :  { %v559_v31 = vld [vmem:[%s802_s1 + $0x38] sm:$0xff]  ;;  %v403_v35 = vld [vmem:[%s806_s5 + $0x8] sm:$0xff]  ;;  %v404_v37 = vld [vmem:[%s806_s5 + $0x10] sm:$0xff]  ;;  %s487_s1 = sshll.u32 %s808_s7, 4  ;;  %s488_s1 = int_to_ptr.hbm [resolvable:$true] %s487_s1 }
  0x13   :  { %v405_v36 = vld [vmem:[%s806_s5 + $0x18] sm:$0xff]  ;;  %v299_v38 = vld [vmem:[%s805_s4 + $0x30] sm:$0xff]  ;;  %v406_v40 = vld [vmem:[%s806_s5 + $0x20] sm:$0xff] }
  0x14   :  { %v300_v39 = vld [vmem:[%s805_s4 + $0x38] sm:$0xff]  ;;  %v407_v41 = vld [vmem:[%s806_s5 + $0x28] sm:$0xff]  ;;  %v408_v43 = vld [vmem:[%s806_s5 + $0x30] sm:$0xff] }
  0x15   :  { %110 = vperm.xlu1 %576, %v56_v12   ;;  %105 = vperm.xlu0 %575, %v55_v13   ;;  %v409_v42 = vld [vmem:[%s806_s5 + $0x38] sm:$0xff]  ;;  %v471_v44 = vld [vmem:[#allocation2] sm:$0x1] }
  0x18   :  { %95 = vperm.xlu2 %577, %v53_v16  }
  0x19   :  { %529 = vmatmul.msk.bf16.gmra.mxu0 %vm183_vm1, %v553_v14  ;;  %533 = vmatmul.msk.bf16.gmra.mxu2 %vm183_vm1, %v557_v15 }
  0x1d   :  { %100 = vperm.xlu0 %575, %v54_v17   ;;  %85 = vperm.xlu1 %576, %v51_v18  }
  0x20   :  { %90 = vperm.xlu2 %577, %v52_v19  }
  0x25   :  { %80 = vperm.xlu1 %576, %v50_v20   ;;  %75 = vperm.xlu0 %575, %v49_v21  }
  0x28   :  { %65 = vperm.xlu2 %577, %v47_v24  }
  0x29   :  { %530 = vmatmul.msk.bf16.gmra.mxu0 %vm183_vm1, %v554_v22  ;;  %534 = vmatmul.msk.bf16.gmra.mxu2 %vm183_vm1, %v558_v23 }
  0x2d   :  { %303 = vperm.xlu1 %576, %v293_v25   ;;  %70 = vperm.xlu0 %575, %v48_v26  }
  0x30   :  { %308 = vperm.xlu2 %577, %v294_v27  }
  0x35   :  { %318 = vperm.xlu1 %576, %v296_v28   ;;  %313 = vperm.xlu0 %575, %v295_v29  }
  0x38   :  { %323 = vperm.xlu2 %577, %v297_v32  }
  0x39   :  { %531 = vmatmul.msk.bf16.gmra.mxu0 %vm183_vm1, %v555_v30  ;;  %535 = vmatmul.msk.bf16.gmra.mxu2 %vm183_vm1, %v559_v31 }
  0x3d   :  { %412 = vperm.xlu1 %576, %v402_v33   ;;  %328 = vperm.xlu0 %575, %v298_v34  }
  0x40   :  { %417 = vperm.xlu2 %577, %v403_v35  }
  0x45   :  { %427 = vperm.xlu1 %576, %v405_v36   ;;  %422 = vperm.xlu0 %575, %v404_v37  }
  0x48   :  { %333 = vperm.xlu2 %577, %v299_v38  }
  0x4d   :  { %338 = vperm.xlu1 %576, %v300_v39   ;;  %432 = vperm.xlu0 %575, %v406_v40  }
  0x50   :  { %437 = vperm.xlu2 %577, %v407_v41  }
  0x55   :  { %447 = vperm.xlu1 %576, %v409_v42   ;;  %442 = vperm.xlu0 %575, %v408_v43  }
  0x58   :  { %474 = vperm.xlu2 %577, %v471_v44  }
  0x62   :  { %v116_v59 = vpop.permute.xlu2 %115 }
  0x6a   :  { %v121_v0 = vpop.permute.xlu2 %120 }
  0x72   :  { %v96_v14 = vpop.permute.xlu2 %95 }
  0x77   :  { %v136_v53 = vpop.permute.xlu0 %135  ;;  %v126_v55 = vpop.permute.xlu1 %125 }
  0x7a   :  { %v91_v30 = vpop.permute.xlu2 %90 }
  0x7f   :  { %v141_v57 = vpop.permute.xlu0 %140  ;;  %v131_v60 = vpop.permute.xlu1 %130 }
  0x86   :  { %v780_v45 = vpop.f32.mrf.mxu0 }
  0x87   :  { %v106_v62 = vpop.permute.xlu0 %105  ;;  %v111_v1 = vpop.permute.xlu1 %110 }
  0x8c   :  { %v241_v46 = vpop.f32.mrf.mxu2 }
  0x8d   :  { %v242_v20 = vadd.f32 %v241_v46, %v106_v62 }
  0x8e   :  { %v782_v47 = vpop.f32.mrf.mxu0 }
  0x8f   :  { %v101_v7 = vpop.permute.xlu0 %100  ;;  %v86_v21 = vpop.permute.xlu1 %85  ;;  %v269_v29 = vmax.f32 %v242_v20, 0.0 }
  0x94   :  { %v243_v48 = vpop.f32.mrf.mxu2 }
  0x95   :  { %v244_v17 = vadd.f32 %v243_v48, %v111_v1 }
  0x96   :  { %v226_v49 = vpop.f32.mrf.mxu0 }
  0x97   :  { %v270_v24 = vmax.f32 %v244_v17, 0.0  ;;  %v76_v25 = vpop.permute.xlu0 %75  ;;  %v81_v36 = vpop.permute.xlu1 %80 }
  0x98   :  { %v227_v37 = vadd.f32 %v226_v49, %v76_v25 }
  0x99   :  { %v281_v31 = vpack.c.bf16 %v270_v24, %v269_v29 }
  0x9a   :  { %v263_v43 = vmax.f32 %v227_v37, 0.0 }
  0x9c   :  { %v246_v50 = vpop.f32.mrf.mxu2 }
  0x9d   :  { %v247_v15 = vadd.f32 %v246_v50, %v116_v59  ;;  %v66_v50 = vpop.permute.xlu2 %65 }
  0x9e   :  { %v228_v52 = vpop.f32.mrf.mxu0 }
  0x9f   :  { %v271_v23 = vmax.f32 %v247_v15, 0.0  ;;  %v229_v38 = vadd.f32 %v228_v52, %v81_v36  ;;  %v71_v42 = vpop.permute.xlu0 %70 }
  0xa0   :  { %v224_v46 = vadd.f32 %v782_v47, %v71_v42  ;;  %v561_v47 = vld [vmem:[%s804_s3 + $0x8] sm:$0xff] }
  0xa1   :  { %v264_v44 = vmax.f32 %v229_v38, 0.0 }
  0xa4   :  { %v248_v51 = vpop.f32.mrf.mxu2 }
  0xa5   :  { %v249_v11 = vadd.f32 %v248_v51, %v121_v0  ;;  %v222_v51 = vadd.f32 %v780_v45, %v66_v50  ;;  %v562_v45 = vld [vmem:[%s804_s3 + $0x10] sm:$0xff] }
  0xa6   :  { %v231_v56 = vpop.f32.mrf.mxu0 }
  0xa7   :  { %v272_v18 = vmax.f32 %v249_v11, 0.0  ;;  %v232_v32 = vadd.f32 %v231_v56, %v86_v21  ;;  %v261_v49 = vmax.f32 %v222_v51, 0.0  ;;  %v563_v56 = vld [vmem:[%s804_s3 + $0x18] sm:$0xff]  ;;  %v314_v59 = vpop.permute.xlu0 %313 }
  0xa9   :  { %v282_v28 = vpack.c.bf16 %v272_v18, %v271_v23  ;;  %v265_v39 = vmax.f32 %v232_v32, 0.0 }
  0xac   :  { %v251_v54 = vpop.f32.mrf.mxu2 }
  0xad   :  { %v252_v8 = vadd.f32 %v251_v54, %v126_v55  ;;  %v278_v54 = vpack.c.bf16 %v264_v44, %v263_v43  ;;  %v560_v55 = vld [vmem:[%s804_s3] sm:$0xff]  ;;  %s605_s3 = smov [#allocation3]  }
  0xae   :  { %v233_v61 = vpop.f32.mrf.mxu0  ;;  %s485_s12 = sshll.u32 %s605_s3, 4  ;;  %s486_s12 = int_to_ptr.vmem [resolvable:$true] %s485_s12 }
  0xaf   :  { %v273_v16 = vmax.f32 %v252_v8, 0.0  ;;  %v234_v33 = vadd.f32 %v233_v61, %v91_v30  ;;  %v329_v1 = vpop.permute.xlu0 %328 }
  0xb1   :  { %v266_v40 = vmax.f32 %v234_v33, 0.0 }
  0xb3   :  { %v279_v48 = vpack.c.bf16 %v266_v40, %v265_v39 }
  0xb4   :  { %v253_v58 = vpop.f32.mrf.mxu2 }
  0xb5   :  { %v254_v5 = vadd.f32 %v253_v58, %v131_v60  ;;  %v309_v58 = vpop.permute.xlu2 %308 }
  0xb6   :  { %v236_v3 = vpop.f32.mrf.mxu0 }
  0xb7   :  { %v274_v12 = vmax.f32 %v254_v5, 0.0  ;;  %v237_v26 = vadd.f32 %v236_v3, %v96_v14 }
  0xb9   :  { %v283_v19 = vpack.c.bf16 %v274_v12, %v273_v16  ;;  %v267_v34 = vmax.f32 %v237_v26, 0.0 }
  0xbc   :  { %v256_v63 = vpop.f32.mrf.mxu2 }
  0xbd   :  { %v257_v2 = vadd.f32 %v256_v63, %v136_v53  ;;  %v262_v53 = vmax.f32 %v224_v46, 0.0  ;;  %v324_v62 = vpop.permute.xlu2 %323 }
  0xbe   :  { %v238_v22 = vpop.f32.mrf.mxu0 }
  0xbf   :  { %v275_v9 = vmax.f32 %v257_v2, 0.0  ;;  %v239_v27 = vadd.f32 %v238_v22, %v101_v7  ;;  %v277_v52 = vpack.c.bf16 %v262_v53, %v261_v49 }
  0xc1   :  { %v268_v35 = vmax.f32 %v239_v27, 0.0 }
  0xc3   :  { %v280_v41 = vpack.c.bf16 %v268_v35, %v267_v34 }
  0xc4   :  { %v258_v4 = vpop.f32.mrf.mxu2 }
  0xc5   :  { %v259_v6 = vadd.f32 %v258_v4, %v141_v57  ;;  %v304_v57 = vpop.permute.xlu1 %303  ;;  %v418_v4 = vpop.permute.xlu2 %417 }
  0xc7   :  { %v276_v10 = vmax.f32 %v259_v6, 0.0  ;;  %v423_v6 = vpop.permute.xlu0 %422 }
  0xc9   :  { %v284_v13 = vpack.c.bf16 %v276_v10, %v275_v9 }
  0xcb   :  { %365 = vmatpush.bf16.msra.mxu1 %v284_v13  ;;  %565 = vmatpush.bf16.msra.mxu3 %v284_v13 }
  0xcd   :  { %v319_v61 = vpop.permute.xlu1 %318  ;;  %v334_v15 = vpop.permute.xlu2 %333 }
  0xcf   :  { %366 = vmatpush.bf16.msra.mxu1 %v283_v19  ;;  %566 = vmatpush.bf16.msra.mxu3 %v283_v19  ;;  %v433_v18 = vpop.permute.xlu0 %432 }
  0xd3   :  { %367 = vmatpush.bf16.msra.mxu1 %v282_v28  ;;  %567 = vmatpush.bf16.msra.mxu3 %v282_v28 }
  0xd5   :  { %v413_v2 = vpop.permute.xlu1 %412  ;;  %v438_v34 = vpop.permute.xlu2 %437 }
  0xd7   :  { %368 = vmatpush.bf16.msra.mxu1 %v281_v31  ;;  %568 = vmatpush.bf16.msra.mxu3 %v281_v31  ;;  %v443_v37 = vpop.permute.xlu0 %442 }
  0xdb   :  { %369 = vmatpush.bf16.msra.mxu1 %v280_v41  ;;  %569 = vmatpush.bf16.msra.mxu3 %v280_v41 }
  0xdd   :  { %v428_v9 = vpop.permute.xlu1 %427 }
  0xdf   :  { %370 = vmatpush.bf16.msra.mxu1 %v279_v48  ;;  %570 = vmatpush.bf16.msra.mxu3 %v279_v48 }
  0xe3   :  { %371 = vmatpush.bf16.msra.mxu1 %v278_v54  ;;  %571 = vmatpush.bf16.msra.mxu3 %v278_v54 }
  0xe5   :  { %v339_v27 = vpop.permute.xlu1 %338 }
  0xe7   :  { %372 = vmatpush.bf16.msra.mxu1 %v277_v52  ;;  %572 = vmatpush.bf16.msra.mxu3 %v277_v52  ;;  %v475_v52 = vpop.permute.xlu2 %474 }
  0xea   :  { %373 = vmatmul.bf16.vlgmr.msra.gmra.mxu1 %v560_v55  ;;  %378 = vmatmul.bf16.vlgmr.msra.gmra.mxu3 %v561_v47  ;;  %v477_v47 = vperm.slane %v475_v52, 0 }
  0xed   :  { %v448_v44 = vpop.permute.xlu1 %447 }
  0xfa   :  { %383 = vmatmul.bf16.gmra.mxu3 %v562_v45 }
 0x10a   :  { %388 = vmatmul.bf16.gmra.mxu3 %v563_v56 }
 0x167   :  { %v374_v63 = vpop.f32.mrf.mxu1 }
 0x168   :  { %v375_v8 = vadd.f32 %v374_v63, %v304_v57 }
 0x16a   :  { %v394_v12 = vmax.f32 %v375_v8, 0.0 }
 0x16c   :  { %v450_v19 = vmul.f32 %v413_v2, %v394_v12 }
 0x16d   :  { %v379_v60 = vpop.f32.mrf.mxu3 }
 0x16e   :  { %v380_v13 = vadd.f32 %v379_v60, %v314_v59 }
 0x16f   :  { %v376_v5 = vpop.f32.mrf.mxu1 }
 0x170   :  { %v377_v7 = vadd.f32 %v376_v5, %v309_v58  ;;  %v396_v20 = vmax.f32 %v380_v13, 0.0 }
 0x172   :  { %v395_v11 = vmax.f32 %v377_v7, 0.0  ;;  %v452_v28 = vmul.f32 %v423_v6, %v396_v20 }
 0x174   :  { %v451_v16 = vmul.f32 %v418_v4, %v395_v11 }
 0x175   :  { %v381_v0 = vpop.f32.mrf.mxu3 }
 0x176   :  { %v382_v14 = vadd.f32 %v381_v0, %v319_v61  ;;  %v458_v24 = vadd.f32 %v451_v16, %v450_v19 }
 0x178   :  { %v397_v21 = vmax.f32 %v382_v14, 0.0  ;;  %v459_v31 = vadd.f32 %v458_v24, %v452_v28 }
 0x17a   :  { %v453_v29 = vmul.f32 %v428_v9, %v397_v21 }
 0x17c   :  { %v460_v35 = vadd.f32 %v459_v31, %v453_v29 }
 0x17d   :  { %v384_v3 = vpop.f32.mrf.mxu3 }
 0x17e   :  { %v385_v17 = vadd.f32 %v384_v3, %v324_v62 }
 0x180   :  { %v398_v25 = vmax.f32 %v385_v17, 0.0 }
 0x182   :  { %v454_v32 = vmul.f32 %v433_v18, %v398_v25 }
 0x184   :  { %v461_v39 = vadd.f32 %v460_v35, %v454_v32 }
 0x185   :  { %v386_v10 = vpop.f32.mrf.mxu3 }
 0x186   :  { %v387_v22 = vadd.f32 %v386_v10, %v329_v1 }
 0x188   :  { %v399_v30 = vmax.f32 %v387_v22, 0.0 }
 0x18a   :  { %v455_v36 = vmul.f32 %v438_v34, %v399_v30 }
 0x18c   :  { %v462_v42 = vadd.f32 %v461_v39, %v455_v36 }
 0x18d   :  { %v389_v23 = vpop.f32.mrf.mxu3 }
 0x18e   :  { %v390_v26 = vadd.f32 %v389_v23, %v334_v15 }
 0x190   :  { %v400_v33 = vmax.f32 %v390_v26, 0.0 }
 0x192   :  { %v456_v40 = vmul.f32 %v443_v37, %v400_v33 }
 0x194   :  { %v463_v46 = vadd.f32 %v462_v42, %v456_v40 }
 0x195   :  { %v391_v38 = vpop.f32.mrf.mxu3 }
 0x196   :  { %v392_v41 = vadd.f32 %v391_v38, %v339_v27 }
 0x198   :  { %v401_v43 = vmax.f32 %v392_v41, 0.0 }
 0x19a   :  { %v457_v48 = vmul.f32 %v448_v44, %v401_v43 }
 0x19c   :  { %v464_v50 = vadd.f32 %v463_v46, %v457_v48 }
 0x19e   :  { %v465_v51 = vrot.slane %v464_v50, 4 }
 0x1a0   :  { %v466_v53 = vadd.f32 %v465_v51, %v464_v50 }
 0x1a2   :  { %v467_v54 = vrot.slane %v466_v53, 2 }
 0x1a4   :  { %v468_v49 = vadd.f32 %v467_v54, %v466_v53 }
 0x1a6   :  { %v469_v55 = vrot.slane %v468_v49, 1 }
 0x1a8   :  { %v470_v45 = vadd.f32 %v469_v55, %v468_v49 }
 0x1aa   :  { %v478_v56 = vadd.f32 %v477_v47, %v470_v45 }
 0x1ac   :  { %479 = vst [vmem:[#allocation3] sm:$0x1] %v478_v56 }
 0x1ad   :  { %490 = dma.vmem_to_hbm [thread:$0]  %s486_s12, 16, %s488_s1, [#allocation4]  }
 0x1ae   :  { %602 = dma.done.wait [#allocation4], 16  }
 0x1af   :  { %603 = vsyncadd [#allocation4], 4294967280 }
 0x1b0   :  { %495 = vsyncpa [#allocation4], 1 }

</bundles_post_ra>
